<compile_context>
chip_gen: v5e
topology: v5e:2x2
jax: 0.10.0
libtpu: 0.0.40
codegen_flags: <defaults>
</compile_context>

<pallas_src>
import jax
import jax.numpy as jnp
from jax.experimental import pallas as pl
from jax.experimental.pallas import tpu as pltpu


# --------------------------------- kernel ---------------------------------
def _kernel(v_ref, qr_ref, s_ref, l_ref, out_ref):
    # v_ref  : (bb*I, HW)    batch tile of the input, (b, i)-major rows, spatial on lanes
    # qr_ref : (8, HW)       reduction weights, rows [tw, tw*y, tw*x, 0, 0, 0, 0, 0]
    # s_ref  : (8, HWp)      epilogue basis,    rows [1,  y,    x,   0, 0, 0, 0, 0]
    # l_ref  : (5*G, bb*I)   block-diagonal weight stack, G = bb*FO, rows ordered (k, b, fo)
    # out_ref: (G, HWp)      lane-dense output slab, rows ordered (b, fo)
    f32 = jnp.float32
    g = out_ref.shape[0]

    # (1) weighted spatial reductions for the whole tile: one MXU call, K = HW.
    #     columns of r: [integral(v), integral(y*v), integral(x*v), 0, 0, 0, 0, 0]
    r = jax.lax.dot_general(v_ref[...], qr_ref[...],
                            (((1,), (1,)), ((), ())),
                            preferred_element_type=f32)                    # (bb*I, 8)

    # (2) all five weight contractions for the whole tile: one MXU call, K = bb*I.
    p = jnp.dot(l_ref[...], r, preferred_element_type=f32)                 # (5*G, 8)
    const = p[0 * g:1 * g, 0:1] + p[1 * g:2 * g, 1:2] + p[2 * g:3 * g, 2:3]  # (G, 1)
    cy = p[3 * g:4 * g, 0:1]                                               # (G, 1)
    cx = p[4 * g:5 * g, 0:1]                                               # (G, 1)

    # coeff[:, 0:3] = [const, cy, cx]; columns 3..7 zero (they multiply the zero rows of S).
    lane = jax.lax.broadcasted_iota(jnp.int32, (1, 8), 1)
    coeff = (jnp.where(lane == 0, const, 0.0)
             + jnp.where(lane == 1, cy, 0.0)
             + jnp.where(lane == 2, cx, 0.0))                              # (G, 8) f32

    # (3) epilogue: one MXU call, K = 8, single lane-dense store of the whole tile.
    out_ref[...] = jnp.dot(coeff, s_ref[...],
                           preferred_element_type=f32).astype(out_ref.dtype)


# --------------------------------- wrapper --------------------------------
def _trap_weights(n):
    return jnp.ones((n,), jnp.float32).at[0].set(0.5).at[-1].set(0.5)


def _vmem_budgets():
    # generation-aware: stay well inside v7x's 64 MiB/TC, allow more on v5e/v6e (128 MiB).
    try:
        cap = int(pltpu.get_tpu_info().vmem_capacity_bytes)
    except Exception:
        cap = 64 << 20
    tile_budget = (24 << 20) if cap <= (64 << 20) else (40 << 20)
    return tile_budget, int(0.75 * cap)


def _pick_batch_block(B, I, FO, HW, HWp, in_bytes, budget):
    def legal(bb):
        if B % bb:
            return False
        if bb != B and ((bb * I) % 8 or (bb * FO) % 8):   # (8,128) block constraint
            return False
        return True

    def footprint(bb):
        v_blk = 2 * bb * I * HW * in_bytes            # double-buffered input tile
        o_blk = 2 * bb * FO * HWp * in_bytes          # double-buffered output tile
        l_blk = 2 * 5 * bb * FO * bb * I * 4          # resident block-diag weights
        consts = 2 * (8 * HW * in_bytes + 8 * HWp * 4)
        return v_blk + o_blk + l_blk + consts

    cands = [bb for bb in range(1, B + 1) if legal(bb)]
    fit2 = [bb for bb in cands if footprint(bb) <= budget and B // bb >= 2]
    if fit2:                        # prefer >= 2 grid steps (v7x has 2 TensorCores)
        return max(fit2)
    fit = [bb for bb in cands if footprint(bb) <= budget]
    if fit:
        return max(fit)
    return min(cands)               # nothing fits the budget: smallest legal tile


def full_rank_linear_kernel(v, Wx, Wy, Bias, *, batch_block=None):
    """v: (B, I, H, W); Wx/Wy: (F, O, I, 2); Bias: (F, O, I) -> (B, F*O, H, W)."""
    B, I, H, W = v.shape
    F, O, I2, two = Wx.shape
    assert I2 == I and two == 2
    FO, HW = F * O, H * W
    HWp = ((HW + 127) // 128) * 128

    if v.dtype not in (jnp.float32, jnp.bfloat16):
        v = v.astype(jnp.float32)
    dt = v.dtype
    in_bytes = jnp.dtype(dt).itemsize

    # ---- constant slabs (host side) --------------------------------------
    # module convention: meshgrid(x_lin, y_lin, indexing='xy'), x = stack((y_coords, x_coords));
    # dx (x-spacing) is used as the weight for BOTH integration dimensions.
    # TODO(synk): mondrian_lib integral_2d source unavailable; trapezoidal rule with spacing dx
    #             on both dims assumed (matches the in-script reference below).
    x_lin = jnp.linspace(-1.0, 1.0, W, dtype=jnp.float32)
    y_lin = jnp.linspace(-1.0, 1.0, H, dtype=jnp.float32)
    dx = x_lin[1] - x_lin[0]
    tw = ((dx * dx) * (_trap_weights(H)[:, None] * _trap_weights(W)[None, :])).reshape(1, HW)
    yc = jnp.broadcast_to(y_lin[:, None], (H, W)).reshape(1, HW)
    xc = jnp.broadcast_to(x_lin[None, :], (H, W)).reshape(1, HW)

    # reduction weights (8, HW): zero rows 3..7 keep R's extra columns exactly zero.
    qr = jnp.concatenate([tw, tw * yc, tw * xc, jnp.zeros((5, HW), jnp.float32)],
                         axis=0).astype(dt)
    # epilogue basis (8, HWp): [1, y, x, 0...], lane-padded (padded pixels are cropped after).
    s = jnp.concatenate([jnp.ones((1, HW), jnp.float32), yc, xc,
                         jnp.zeros((5, HW), jnp.float32)], axis=0)
    if HWp != HW:
        s = jnp.pad(s, ((0, 0), (0, HWp - HW)))

    budget, vmem_cap = _vmem_budgets()
    bb = None
    if batch_block:
        cand = int(batch_block)
        if B % cand == 0 and (cand == B or ((cand * I) % 8 == 0 and (cand * FO) % 8 == 0)):
            bb = cand
    if bb is None:
        bb = _pick_batch_block(B, I, FO, HW, HWp, in_bytes, budget)
    G = bb * FO

    # block-diagonal (over the batch tile) weight stack, rows ordered (k, b, fo) with
    # k in [Bias, Wy0, Wy1, Wx0, Wx1]; one (5G, bb*I) matmul replaces all per-sample work.
    w5 = jnp.stack([Bias.reshape(FO, I),
                    Wy[..., 0].reshape(FO, I), Wy[..., 1].reshape(FO, I),
                    Wx[..., 0].reshape(FO, I), Wx[..., 1].reshape(FO, I)],
                   axis=0).astype(jnp.float32)                              # (5, FO, I)
    eye_b = jnp.eye(bb, dtype=jnp.float32)
    L = jnp.einsum('kfi,bc->kbfci', w5, eye_b).reshape(5 * G, bb * I)       # (5G, bb*I)

    v2d = v.reshape(B * I, HW)      # pure reshape of NCHW input — no transpose, no copy

    per_step = (2 * bb * I * HW * in_bytes + 2 * G * HWp * in_bytes
                + 2 * 5 * G * bb * I * 4 + 2 * (8 * HW * in_bytes + 8 * HWp * 4))
    vmem_limit = int(min(vmem_cap, max(32 << 20, per_step + (8 << 20))))

    flops = (2 * B * I * HW * 8                       # reduction matmul
             + 2 * (B // bb) * 5 * G * bb * I * 8     # weight contraction
             + 2 * B * FO * HWp * 8)                  # epilogue matmul
    bytes_accessed = ((B * I * HW + B * FO * HWp) * in_bytes
                      + 8 * HW * in_bytes + 8 * HWp * 4 + 5 * G * bb * I * 4)

    out = pl.pallas_call(
        _kernel,
        out_shape=jax.ShapeDtypeStruct((B * FO, HWp), dt),
        grid=(B // bb,),
        in_specs=[
            pl.BlockSpec((bb * I, HW), lambda i: (i, 0)),
            pl.BlockSpec((8, HW), lambda i: (0, 0)),          # constant: fetched once
            pl.BlockSpec((8, HWp), lambda i: (0, 0)),         # constant: fetched once
            pl.BlockSpec((5 * G, bb * I), lambda i: (0, 0)),  # constant: fetched once
        ],
        out_specs=pl.BlockSpec((G, HWp), lambda i: (i, 0)),
        compiler_params=pltpu.CompilerParams(
            dimension_semantics=("parallel",),
            vmem_limit_bytes=vmem_limit),
        cost_estimate=pl.CostEstimate(flops=flops, transcendentals=0,
                                      bytes_accessed=bytes_accessed),
    )(v2d, qr, s, L)

    if HWp != HW:
        out = out[:, :HW]
    return out.reshape(B, FO, H, W)


# ---------------- pure-JAX reference (literal translation of the module) ----------------
def _trap_sum(a, dx, axis):
    n = a.shape[axis]
    w = (jnp.ones((n,), a.dtype).at[0].set(0.5).at[-1].set(0.5)) * dx
    shape = [1] * a.ndim
    shape[axis] = n
    return jnp.sum(a * w.reshape(shape), axis=axis)


def _integral_2d(a, dx, dim1, dim2):
    a = _trap_sum(a, dx, dim2)   # dim1 < dim2, so dim1 index is unchanged afterwards
    return _trap_sum(a, dx, dim1)


def reference(v, Wx, Wy, Bias):
    b, ci, H, W = v.shape
    x_lin = jnp.linspace(-1.0, 1.0, W, dtype=jnp.float32)
    y_lin = jnp.linspace(-1.0, 1.0, H, dtype=jnp.float32)
    xg, yg = jnp.meshgrid(x_lin, y_lin, indexing='xy')
    x = jnp.stack((yg, xg), axis=-1)                               # (H, W, 2)
    Wxg = jnp.einsum('foid,hwd->hwfoi', Wx, x, precision='highest')
    BWx = Bias[None, None] + Wxg
    Wyg = jnp.einsum('foid,hwd->hwfoi', Wy, x, precision='highest')
    vp = jnp.transpose(v, (0, 2, 3, 1))                            # (B, H, W, I)
    dx = xg[0, 1] - xg[0, 0]
    integral_vp = _integral_2d(vp, dx, 1, 2)                       # (B, I)
    scaled = jnp.einsum('hwfoi,bi->bhwfo', BWx, integral_vp, precision='highest')
    Wyvp = jnp.einsum('hwfoi,bhwi->bhwfo', Wyg, vp, precision='highest')
    iw = _integral_2d(Wyvp, dx, 1, 2)                              # (B, F, O)
    up = scaled + iw[:, None, None]
    up = up.reshape(b, H, W, -1)
    return up.transpose(0, 3, 1, 2)


if __name__ == "__main__":
    in_channels, out_channels, hidden_channels, num_filters = 4, 8, 32, 2
    O = out_channels // num_filters
    Bsz, H, W = 2, 16, 16

    key = jax.random.PRNGKey(0)
    k1, k2, k3, k4 = jax.random.split(key, 4)
    # deterministic kaiming-normal-style init (fan_in mode, gain = sqrt(2))
    std_w = (2.0 / (O * in_channels * 2)) ** 0.5
    std_b = (2.0 / (O * in_channels)) ** 0.5
    Wx = std_w * jax.random.normal(k1, (num_filters, O, in_channels, 2), jnp.float32)
    Wy = std_w * jax.random.normal(k2, (num_filters, O, in_channels, 2), jnp.float32)
    Bias = std_b * jax.random.normal(k3, (num_filters, O, in_channels), jnp.float32)
    v = jax.random.normal(k4, (Bsz, in_channels, H, W), jnp.float32)

    out = full_rank_linear_kernel(v, Wx, Wy, Bias)
    out = jax.block_until_ready(out)

    ref = reference(v, Wx, Wy, Bias)
    assert out.shape == (Bsz, out_channels, H, W), out.shape
    err = float(jnp.max(jnp.abs(out - ref)))
    assert jnp.allclose(out, ref, rtol=2e-3, atol=2e-3), f"max abs err {err}"
    print("KERNEL_OK")
</pallas_src>

<mosaic_0001>
module attributes {stable_mosaic.version = 11 : i64} {
  func.func @_kernel(%arg0: i32, %arg1: memref<8x256xf32, #tpu.memory_space<vmem>>, %arg2: memref<8x256xf32, #tpu.memory_space<vmem>>, %arg3: memref<8x256xf32, #tpu.memory_space<vmem>>, %arg4: memref<80x8xf32, #tpu.memory_space<vmem>>, %arg5: memref<16x256xf32, #tpu.memory_space<vmem>>) attributes {dimension_semantics = [#tpu.dimension_semantics<parallel>], iteration_bounds = array<i64: 1>, scalar_prefetch = 0 : i64, scratch_operands = 0 : i64, tpu.core_type = #tpu.core_type<tc>, window_params = [{transform_indices = @transform_0, window_bounds = array<i64: 8, 256>}, {pipeline_mode = #tpu.pipeline_mode<synchronous>, transform_indices = @transform_1, window_bounds = array<i64: 8, 256>}, {pipeline_mode = #tpu.pipeline_mode<synchronous>, transform_indices = @transform_2, window_bounds = array<i64: 8, 256>}, {pipeline_mode = #tpu.pipeline_mode<synchronous>, transform_indices = @transform_3, window_bounds = array<i64: 80, 8>}, {transform_indices = @transform_4, window_bounds = array<i64: 16, 256>}]} {
    %c0 = arith.constant 0 : index
    %c0_0 = arith.constant 0 : index
    %0 = vector.load %arg1[%c0, %c0_0] : memref<8x256xf32, #tpu.memory_space<vmem>>, vector<8x256xf32>
    %c0_1 = arith.constant 0 : index
    %c0_2 = arith.constant 0 : index
    %1 = vector.load %arg2[%c0_1, %c0_2] : memref<8x256xf32, #tpu.memory_space<vmem>>, vector<8x256xf32>
    %cst = arith.constant dense<0.000000e+00> : vector<8x8xf32>
    %2 = tpu.matmul %0, %1, %cst {dimension_numbers = #tpu.dot_dimension_numbers<[1], [1], [0], [0], [0, 0, 1, 0], [], []>} : vector<8x256xf32>, vector<8x256xf32>, vector<8x8xf32> -> vector<8x8xf32>
    %c0_3 = arith.constant 0 : index
    %c0_4 = arith.constant 0 : index
    %3 = vector.load %arg4[%c0_3, %c0_4] : memref<80x8xf32, #tpu.memory_space<vmem>>, vector<80x8xf32>
    %cst_5 = arith.constant dense<0.000000e+00> : vector<80x8xf32>
    %4 = tpu.matmul %3, %2, %cst_5 {dimension_numbers = #tpu.dot_dimension_numbers<[1], [0], [0], [1], [0, 0, 1, 1], [], []>} : vector<80x8xf32>, vector<8x8xf32>, vector<80x8xf32> -> vector<80x8xf32>
    %5 = vector.extract_strided_slice %4 {offsets = [0, 0], sizes = [16, 1], strides = [1, 1]} : vector<80x8xf32> to vector<16x1xf32>
    %6 = vector.extract_strided_slice %4 {offsets = [16, 1], sizes = [16, 1], strides = [1, 1]} : vector<80x8xf32> to vector<16x1xf32>
    %7 = arith.addf %5, %6 : vector<16x1xf32>
    %8 = vector.extract_strided_slice %4 {offsets = [32, 2], sizes = [16, 1], strides = [1, 1]} : vector<80x8xf32> to vector<16x1xf32>
    %9 = arith.addf %7, %8 : vector<16x1xf32>
    %10 = vector.extract_strided_slice %4 {offsets = [48, 0], sizes = [16, 1], strides = [1, 1]} : vector<80x8xf32> to vector<16x1xf32>
    %11 = vector.extract_strided_slice %4 {offsets = [64, 0], sizes = [16, 1], strides = [1, 1]} : vector<80x8xf32> to vector<16x1xf32>
    %12 = tpu.iota {dimensions = array<i32: 1>} : vector<1x8xi32>
    %c0_i32 = arith.constant 0 : i32
    %13 = vector.broadcast %c0_i32 : i32 to vector<1x8xi32>
    %14 = arith.cmpi eq, %12, %13 : vector<1x8xi32>
    %cst_6 = arith.constant 0.000000e+00 : f32
    %15 = vector.shape_cast %14 : vector<1x8xi1> to vector<1x8xi1>
    %16 = vector.broadcast %15 : vector<1x8xi1> to vector<16x8xi1>
    %17 = vector.shape_cast %9 : vector<16x1xf32> to vector<16x1xf32>
    %18 = vector.broadcast %17 : vector<16x1xf32> to vector<16x8xf32>
    %19 = vector.broadcast %cst_6 : f32 to vector<16x8xf32>
    %20 = arith.select %16, %18, %19 : vector<16x8xi1>, vector<16x8xf32>
    %c1_i32 = arith.constant 1 : i32
    %21 = vector.broadcast %c1_i32 : i32 to vector<1x8xi32>
    %22 = arith.cmpi eq, %12, %21 : vector<1x8xi32>
    %cst_7 = arith.constant 0.000000e+00 : f32
    %23 = vector.shape_cast %22 : vector<1x8xi1> to vector<1x8xi1>
    %24 = vector.broadcast %23 : vector<1x8xi1> to vector<16x8xi1>
    %25 = vector.shape_cast %10 : vector<16x1xf32> to vector<16x1xf32>
    %26 = vector.broadcast %25 : vector<16x1xf32> to vector<16x8xf32>
    %27 = vector.broadcast %cst_7 : f32 to vector<16x8xf32>
    %28 = arith.select %24, %26, %27 : vector<16x8xi1>, vector<16x8xf32>
    %29 = arith.addf %20, %28 : vector<16x8xf32>
    %c2_i32 = arith.constant 2 : i32
    %30 = vector.broadcast %c2_i32 : i32 to vector<1x8xi32>
    %31 = arith.cmpi eq, %12, %30 : vector<1x8xi32>
    %cst_8 = arith.constant 0.000000e+00 : f32
    %32 = vector.shape_cast %31 : vector<1x8xi1> to vector<1x8xi1>
    %33 = vector.broadcast %32 : vector<1x8xi1> to vector<16x8xi1>
    %34 = vector.shape_cast %11 : vector<16x1xf32> to vector<16x1xf32>
    %35 = vector.broadcast %34 : vector<16x1xf32> to vector<16x8xf32>
    %36 = vector.broadcast %cst_8 : f32 to vector<16x8xf32>
    %37 = arith.select %33, %35, %36 : vector<16x8xi1>, vector<16x8xf32>
    %38 = arith.addf %29, %37 : vector<16x8xf32>
    %c0_9 = arith.constant 0 : index
    %c0_10 = arith.constant 0 : index
    %39 = vector.load %arg3[%c0_9, %c0_10] : memref<8x256xf32, #tpu.memory_space<vmem>>, vector<8x256xf32>
    %cst_11 = arith.constant dense<0.000000e+00> : vector<16x256xf32>
    %40 = tpu.matmul %38, %39, %cst_11 {dimension_numbers = #tpu.dot_dimension_numbers<[1], [0], [0], [1], [0, 0, 1, 1], [], []>} : vector<16x8xf32>, vector<8x256xf32>, vector<16x256xf32> -> vector<16x256xf32>
    %c0_12 = arith.constant 0 : index
    %c0_13 = arith.constant 0 : index
    %41 = vector.load %arg5[%c0_12, %c0_13] : memref<16x256xf32, #tpu.memory_space<vmem>>, vector<16x256xf32>
    tpu.vector_store %arg5[%c0_12, %c0_13], %40 {strides = array<i32>} : memref<16x256xf32, #tpu.memory_space<vmem>>, vector<16x256xf32>,
    return
  }
  func.func @transform_0(%arg0: i32) -> (i32, i32) {
    %c0_i32 = arith.constant 0 : i32
    %c0_i32_0 = arith.constant 0 : i32
    return %arg0, %c0_i32 : i32, i32
  }
  func.func @transform_1(%arg0: i32) -> (i32, i32) {
    %c0_i32 = arith.constant 0 : i32
    %c0_i32_0 = arith.constant 0 : i32
    %c0_i32_1 = arith.constant 0 : i32
    return %c0_i32, %c0_i32_0 : i32, i32
  }
  func.func @transform_2(%arg0: i32) -> (i32, i32) {
    %c0_i32 = arith.constant 0 : i32
    %c0_i32_0 = arith.constant 0 : i32
    %c0_i32_1 = arith.constant 0 : i32
    return %c0_i32, %c0_i32_0 : i32, i32
  }
  func.func @transform_3(%arg0: i32) -> (i32, i32) {
    %c0_i32 = arith.constant 0 : i32
    %c0_i32_0 = arith.constant 0 : i32
    %c0_i32_1 = arith.constant 0 : i32
    return %c0_i32, %c0_i32_0 : i32, i32
  }
  func.func @transform_4(%arg0: i32) -> (i32, i32) {
    %c0_i32 = arith.constant 0 : i32
    %c0_i32_0 = arith.constant 0 : i32
    return %arg0, %c0_i32 : i32, i32
  }
}

</mosaic_0001>

<bundles_post_ra>
// kernel: tpu_custom_call.1
= control target key start
LH: loop header
LB: loop body
LE: loop exit
PB: predicated region body
PF: predicated region fallthrough
CT: control target
= control target key end

     0   :  { %s446_s0 = inlined_call_operand.vmem [shape: f32[8,256], index: 0, kind: input, shape index: {}]   ;;  %s447_s1 = inlined_call_operand.vmem [shape: f32[8,256], index: 1, kind: input, shape index: {}]   ;;  %s448_s2 = inlined_call_operand.vmem [shape: f32[8,256], index: 2, kind: input, shape index: {}]   ;;  %s449_s3 = inlined_call_operand.vmem [shape: f32[80,8], index: 3, kind: input, shape index: {}]   ;;  %s450_s4 = inlined_call_operand.hbm [shape: f32[16,256], index: 4, kind: output, shape index: {}]  }
   0x1   :  { %v20_v0 = vld [vmem:[%s447_s1] sm:$0xff]  ;;  %v21_v1 = vld [vmem:[%s447_s1 + $0x8] sm:$0xff] }
   0x2   :  { %37 = vmatpush.xpose.msra.mxu0 %v20_v0  ;;  %57 = vmatpush.xpose.msra.mxu1 %v21_v1  ;;  %v18_v2 = vld [vmem:[%s446_s0] sm:$0xff]  ;;  %v19_v3 = vld [vmem:[%s446_s0 + $0x8] sm:$0xff] }
   0x3   :  { %9 = vsyncpa [#allocation3], 0  ;;  %v62_v7 = vld [vmem:[%s449_s3] sm:$0xff]  ;;  %vm72_vm0 = vcmask 64512   ;;  %v65_v8 = vld [vmem:[%s449_s3 + $0x18] sm:$0xff]  ;;  %v348_v17 = vmov 0   ;;  %v170_v38 = vlaneseq }
   0x4   :  { %v70_v9 = vld [vmem:[%s449_s3 + $0x40] sm:$0xff]  ;;  %v63_v10 = vld [vmem:[%s449_s3 + $0x8] sm:$0xff]  ;;  %v64_v12 = vld [vmem:[%s449_s3 + $0x10] sm:$0xff]  ;;  %320 = vset.pattern.permute.xlu0 %v348_v17  ;;  %319 = vset.pattern.permute.xlu2 %v348_v17  ;;  %s349_s15 = smov 127   ;;  %s350_s16 = smov 126  }
   0x5   :  { %38 = vmatmul.f32.vlgmr.msra.gmra.mxu0 %v18_v2  ;;  %58 = vmatmul.f32.vlgmr.msra.gmra.mxu1 %v19_v3  ;;  %v66_v11 = vld [vmem:[%s449_s3 + $0x20] sm:$0xff]  ;;  %v67_v13 = vld [vmem:[%s449_s3 + $0x28] sm:$0xff]  ;;  %v68_v14 = vld [vmem:[%s449_s3 + $0x30] sm:$0xff]  ;;  %v171_v40 = vand.u32 127, %v170_v38  ;;  %s285_s23 = sshll.u32 %s450_s4, 4  ;;  %s352_s24 = smov 256   ;;  %s286_s23 = int_to_ptr.hbm [resolvable:$true] %s285_s23 }
   0x6   :  { %v71_v15 = vld [vmem:[%s449_s3 + $0x48] sm:$0xff]  ;;  %v69_v16 = vld [vmem:[%s449_s3 + $0x38] sm:$0xff]  ;;  %321 = vset.pattern.permute.xlu1 %v348_v17  ;;  %v221_v36 = vld [vmem:[%s448_s2] sm:$0xff]  ;;  %s353_s1 = smov 16  }
   0x7   :  { %v222_v37 = vld [vmem:[%s448_s2 + $0x8] sm:$0xff]  ;;  %vm187_vm1 = vcmp.eq.s32.totalorder %v171_v40, 1  ;;  %vm172_vm2 = vcmp.eq.s32.totalorder %v171_v40, 0  ;;  %vm204_vm3 = vcmp.eq.s32.totalorder %v171_v40, 2  ;;  %s351_s2 = smov [#allocation2]  }
   0x8   :  { %267 = vmatpush.msrb.mxu0 %v222_v37  ;;  %s283_s20 = sshll.u32 %s351_s2, 4  ;;  %s284_s20 = int_to_ptr.vmem [resolvable:$true] %s283_s20 }
  0x82   :  { %v39_v4 = vpop.f32.mrf.mxu0  ;;  %v59_v5 = vpop.f32.mrf.mxu1 }
  0x83   :  { %v60_v6 = vadd.f32 %v59_v5, %v39_v4 }
  0x85   :  { %118 = vmatpush.msrb.mxu1 %v60_v6  ;;  %311 = vmatpush.msra.mxu2 %v60_v6 }
  0x86   :  { %312 = vmatpush.msra.mxu3 %v60_v6  ;;  %297 = vmatmul.msk.f32.vlgmr.msrb.gmra.mxu1 %vm72_vm0, %v62_v7 }
  0x87   :  { %300 = vmatmul.msk.f32.vlgmr.msra.gmra.mxu2 %vm72_vm0, %v65_v8  ;;  %305 = vmatmul.msk.f32.vlgmr.msra.gmra.mxu3 %vm72_vm0, %v70_v9 }
  0x88   :  { %244 = vmatpush.msrb.mxu3 %v221_v36 }
  0x8e   :  { %298 = vmatmul.msk.f32.gmra.mxu1 %vm72_vm0, %v63_v10 }
  0x8f   :  { %301 = vmatmul.msk.f32.gmra.mxu2 %vm72_vm0, %v66_v11  ;;  %306 = vmatmul.msk.f32.gmra.mxu3 %vm72_vm0, %v71_v15 }
  0x96   :  { %299 = vmatmul.msk.f32.gmra.mxu1 %vm72_vm0, %v64_v12 }
  0x97   :  { %302 = vmatmul.msk.f32.gmra.mxu2 %vm72_vm0, %v67_v13 }
  0x9f   :  { %303 = vmatmul.msk.f32.gmra.mxu2 %vm72_vm0, %v68_v14 }
  0xa7   :  { %304 = vmatmul.msk.f32.gmra.mxu2 %vm72_vm0, %v69_v16 }
 0x103   :  { %v120_v18 = vpop.f32.mrf.mxu1 }
 0x10a   :  { %v129_v19 = vpop.f32.mrf.mxu2  ;;  %v144_v24 = vpop.f32.mrf.mxu3 }
 0x10b   :  { %154 = vrot.lane.b32.xlu1 %v129_v19, %s349_s15  ;;  %v123_v20 = vpop.f32.mrf.mxu1 }
 0x112   :  { %v132_v21 = vpop.f32.mrf.mxu2  ;;  %v147_v34 = vpop.f32.mrf.mxu3 }
 0x113   :  { %v126_v22 = vpop.f32.mrf.mxu1 }
 0x114   :  { %152 = vrot.lane.b32.xlu0 %v126_v22, %s349_s15 }
 0x11a   :  { %v135_v23 = vpop.f32.mrf.mxu2 }
 0x11b   :  { %164 = vrot.lane.b32.xlu1 %v135_v23, %s350_s16 }
 0x11c   :  { %162 = vrot.lane.b32.xlu0 %v132_v21, %s350_s16 }
 0x122   :  { %v138_v25 = vpop.f32.mrf.mxu2 }
 0x123   :  { %192 = vperm.xlu2 %319, %v138_v25  }
 0x124   :  { %209 = vperm.xlu0 %320, %v144_v24  }
 0x12a   :  { %v141_v35 = vpop.f32.mrf.mxu2 }
 0x17d   :  { %v155_v26 = vpop.permute.xlu1 %154  ;;  %v193_v39 = vpop.permute.xlu2 %192 }
 0x17e   :  { %v159_v28 = vadd.f32 %v155_v26, %v123_v20  ;;  %v200_v42 = vsel %vm187_vm1, %v193_v39, 0.0 }
 0x186   :  { %v153_v27 = vpop.permute.xlu0 %152 }
 0x187   :  { %v158_v29 = vadd.f32 %v153_v27, %v120_v18 }
 0x18d   :  { %v165_v30 = vpop.permute.xlu1 %164 }
 0x18e   :  { %v169_v31 = vadd.f32 %v165_v30, %v159_v28  ;;  %v163_v32 = vpop.permute.xlu0 %162 }
 0x18f   :  { %v168_v33 = vadd.f32 %v163_v32, %v158_v29 }
 0x190   :  { %182 = vperm.xlu1 %321, %v169_v31  }
 0x191   :  { %177 = vperm.xlu2 %319, %v168_v33  }
 0x196   :  { %v210_v41 = vpop.permute.xlu0 %209 }
 0x197   :  { %v217_v45 = vsel %vm204_vm3, %v210_v41, 0.0 }
 0x198   :  { %214 = vperm.xlu1 %321, %v147_v34  }
 0x199   :  { %197 = vperm.xlu2 %319, %v141_v35  }
 0x1eb   :  { %v178_v43 = vpop.permute.xlu2 %177 }
 0x1ec   :  { %v185_v44 = vsel %vm172_vm2, %v178_v43, 0.0 }
 0x1ed   :  { %v202_v46 = vadd.f32 %v200_v42, %v185_v44 }
 0x1ef   :  { %v219_v47 = vadd.f32 %v217_v45, %v202_v46 }
 0x1f1   :  { %307 = vmatmul.msk.f32.vlgmr.msrb.gmra.mxu3 %vm72_vm0, %v219_v47  ;;  %309 = vmatmul.msk.f32.vlgmr.msrb.gmra.mxu0 %vm72_vm0, %v219_v47 }
 0x1f3   :  { %v198_v49 = vpop.permute.xlu2 %197 }
 0x1f4   :  { %v201_v51 = vsel %vm187_vm1, %v198_v49, 0.0 }
 0x202   :  { %v183_v48 = vpop.permute.xlu1 %182 }
 0x203   :  { %v186_v50 = vsel %vm172_vm2, %v183_v48, 0.0 }
 0x204   :  { %v203_v52 = vadd.f32 %v201_v51, %v186_v50 }
 0x20a   :  { %v215_v53 = vpop.permute.xlu1 %214 }
 0x20b   :  { %v218_v54 = vsel %vm204_vm3, %v215_v53, 0.0 }
 0x20c   :  { %v220_v55 = vadd.f32 %v218_v54, %v203_v52 }
 0x20e   :  { %308 = vmatmul.msk.f32.gmra.mxu3 %vm72_vm0, %v220_v55  ;;  %310 = vmatmul.msk.f32.gmra.mxu0 %vm72_vm0, %v220_v55 }
 0x26e   :  { %v269_v56 = vpop.f32.mrf.mxu0 }
 0x26f   :  { %276 = vst [vmem:[#allocation2 + $0x8] sm:$0xff] %v269_v56 }
 0x274   :  { %v246_v57 = vpop.f32.mrf.mxu3 }
 0x275   :  { %275 = vst [vmem:[#allocation2] sm:$0xff] %v246_v57 }
 0x28b   :  { %v272_v58 = vpop.f32.mrf.mxu0 }
 0x28c   :  { %278 = vst [vmem:[#allocation2 + $0x18] sm:$0xff] %v272_v58 }
 0x291   :  { %v249_v59 = vpop.f32.mrf.mxu3 }
 0x292   :  { %277 = vst [vmem:[#allocation2 + $0x10] sm:$0xff] %v249_v59 }
 0x293   :  { %291 = dma.vmem_to_hbm [thread:$0]  %s284_s20, 512, %s286_s23, [#allocation3], %s352_s24, %s352_s24, %s353_s1  }
 0x294   :  { %346 = dma.done.wait [#allocation3], 512  }
 0x295   :  { %347 = vsyncadd [#allocation3], 4294966784 }
 0x296   :  { %296 = vsyncpa [#allocation3], 1 }

</bundles_post_ra>
